<compile_context>
chip_gen: v7x
topology: tpu7x:2x2x1
jax: 0.10.0
libtpu: 0.0.40
codegen_flags: <defaults>
</compile_context>

<pallas_src>
import jax
import jax.numpy as jnp
from jax.experimental import pallas as pl
from jax.experimental.pallas import tpu as pltpu


def _round_up(n, m):
    return ((n + m - 1) // m) * m


def _patch_proj_kernel(x_ref, w_ref, b_ref, o_ref):
    # x_ref: (TM, Kp) bf16 patch rows    w_ref: (Kp, Ep) bf16 weight (resident)
    # b_ref: (1, Ep)  f32 bias (resident) o_ref: (TM, Ep) output
    o_ref[...] = (
        jnp.dot(x_ref[...], w_ref[...], preferred_element_type=jnp.float32)
        + b_ref[...]
    ).astype(o_ref.dtype)


def _extract_patches(x, patch_size, stride, compute_dtype=jnp.bfloat16):
    """(B, C, H, W) -> (B, P, C*ph*pw), P = oh*ow.  K ordering = (C, ph, pw)."""
    B, C, H, W = x.shape
    ph, pw = patch_size
    sh, sw = stride
    oh = (H - ph) // sh + 1
    ow = (W - pw) // sw + 1
    # Cast first: the im2col/transpose pass is pure mem-bound XLA glue, so
    # halving the element size halves its HBM traffic.
    x = x.astype(compute_dtype)
    if (sh, sw) == (ph, pw) and H % ph == 0 and W % pw == 0:
        # Non-overlapping patches: pure reshape/transpose, no gather and no
        # data expansion.
        p = x.reshape(B, C, oh, ph, ow, pw)
        p = p.transpose(0, 2, 4, 1, 3, 5)                  # (B, oh, ow, C, ph, pw)
        return p.reshape(B, oh * ow, C * ph * pw), (oh, ow)
    # Overlapping strides: conv_general_dilated_patches instead of a double
    # fancy-index gather.  Output channels are ordered (C, ph, pw), matching
    # weight.reshape(E, C*ph*pw).
    p = jax.lax.conv_general_dilated_patches(
        x, filter_shape=(ph, pw), window_strides=(sh, sw), padding="VALID",
        dimension_numbers=("NCHW", "OIHW", "NCHW"),
    )                                                      # (B, C*ph*pw, oh, ow)
    p = p.reshape(B, C * ph * pw, oh * ow).transpose(0, 2, 1)
    return p, (oh, ow)


def patch_embed_new(x, weight, bias, patch_size, stride):
    """x: (B,C,H,W); weight: (E,C,ph,pw); bias: (E,).  Returns (B, P, E)."""
    B, C, H, W = x.shape
    E = weight.shape[0]
    patches, (oh, ow) = _extract_patches(x, patch_size, stride)
    P = oh * ow
    K = C * patch_size[0] * patch_size[1]
    M = B * P

    # ---- tile sizes ---------------------------------------------------------
    # Whole K per step (single dot, weight resident); lane-dense E.
    Kp = _round_up(K, 128)
    Ep = _round_up(E, 128)
    TM_TARGET = 512                          # multiple of 256 for v6e/v7x MXU
    if M <= TM_TARGET:
        # Small workload: aim for >= 2 m blocks so both v7x TCs get work.
        TM = max(8, _round_up(-(-M // 2), 8))
    else:
        TM = TM_TARGET
    Mp = _round_up(M, TM)
    grid_m = Mp // TM

    # ---- kernel operands: bf16 matmul inputs, f32 bias ----------------------
    pflat = patches.reshape(M, K)            # already bf16 from _extract_patches
    pflat = jnp.pad(pflat, ((0, Mp - M), (0, Kp - K)))
    w2d = jnp.pad(weight.reshape(E, K).T,
                  ((0, Kp - K), (0, Ep - E))).astype(jnp.bfloat16)
    b2d = jnp.pad(bias.reshape(1, E),
                  ((0, 0), (0, Ep - E))).astype(jnp.float32)

    out_itemsize = jnp.dtype(x.dtype).itemsize
    cost = pl.CostEstimate(
        flops=2 * Mp * Kp * Ep,
        transcendentals=0,
        # patches read once, weight/bias fetched once, output written once.
        bytes_accessed=Mp * Kp * 2 + Kp * Ep * 2 + Ep * 4 + Mp * Ep * out_itemsize,
    )

    out = pl.pallas_call(
        _patch_proj_kernel,
        out_shape=jax.ShapeDtypeStruct((Mp, Ep), x.dtype),
        grid_spec=pltpu.PrefetchScalarGridSpec(
            num_scalar_prefetch=0,
            grid=(grid_m,),
            in_specs=[
                pl.BlockSpec((TM, Kp), lambda m: (m, 0)),   # patches tile (streams)
                pl.BlockSpec((Kp, Ep), lambda m: (0, 0)),   # weight (resident)
                pl.BlockSpec((1, Ep), lambda m: (0, 0)),    # bias (resident)
            ],
            out_specs=pl.BlockSpec((TM, Ep), lambda m: (m, 0)),
        ),
        compiler_params=pltpu.CompilerParams(
            dimension_semantics=("parallel",),
            vmem_limit_bytes=48 * 1024 * 1024,   # headroom under v7x's 64 MiB/TC
        ),
        cost_estimate=cost,
    )(pflat, w2d, b2d)

    return out[:M, :E].reshape(B, P, E)


def _reference(x, weight, bias, stride):
    """Pure-JAX reference via lax conv (NCHW, OIHW)."""
    y = jax.lax.conv_general_dilated(
        x, weight, window_strides=stride, padding="VALID",
        dimension_numbers=("NCHW", "OIHW", "NCHW"),
    ) + bias[None, :, None, None]
    B, E, h, w = y.shape
    return y.reshape(B, E, h * w).transpose(0, 2, 1)


def _check(B, C, H, W, patch_size, stride, embed_dim, seed):
    key = jax.random.PRNGKey(seed)
    kx, kw, kb = jax.random.split(key, 3)
    x = jax.random.normal(kx, (B, C, H, W), dtype=jnp.float32)
    # Deterministic Conv2d-style init (uniform in +/- 1/sqrt(fan_in)).
    fan_in = C * patch_size[0] * patch_size[1]
    bound = 1.0 / (fan_in ** 0.5)
    weight = jax.random.uniform(kw, (embed_dim, C, patch_size[0], patch_size[1]),
                                dtype=jnp.float32, minval=-bound, maxval=bound)
    bias = jax.random.uniform(kb, (embed_dim,), dtype=jnp.float32,
                              minval=-bound, maxval=bound)

    out = patch_embed_new(x, weight, bias, patch_size, stride)
    out = jax.block_until_ready(out)

    oh = (H - patch_size[0]) // stride[0] + 1
    ow = (W - patch_size[1]) // stride[1] + 1
    ref = _reference(x, weight, bias, stride)
    assert out.shape == (B, oh * ow, embed_dim), out.shape
    # Tolerance accounts for bf16 matmul inputs (f32 accumulation).
    assert jnp.allclose(out, ref, rtol=2e-2, atol=2e-2), "mismatch vs reference"


if __name__ == "__main__":
    # Overlapping strides (like the module default patch=16 / stride=10):
    # img 16x16, patch 4x4, stride 2, in_chans=4, embed_dim=32 -> 49 patches.
    _check(B=2, C=4, H=16, W=16, patch_size=(4, 4), stride=(2, 2),
           embed_dim=32, seed=0)
    # Non-overlapping strides (reshape-only im2col path): patch=4, stride=4.
    _check(B=2, C=4, H=16, W=16, patch_size=(4, 4), stride=(4, 4),
           embed_dim=32, seed=0)
    print("KERNEL_OK")
</pallas_src>

<mosaic_0001>
module attributes {stable_mosaic.version = 11 : i64} {
  func.func @_patch_proj_kernel(%arg0: i32, %arg1: memref<56x128xbf16, #tpu.memory_space<vmem>>, %arg2: memref<128x128xbf16, #tpu.memory_space<vmem>>, %arg3: memref<1x128xf32, #tpu.memory_space<vmem>>, %arg4: memref<56x128xf32, #tpu.memory_space<vmem>>) attributes {dimension_semantics = [#tpu.dimension_semantics<parallel>], iteration_bounds = array<i64: 2>, scalar_prefetch = 0 : i64, scratch_operands = 0 : i64, tpu.core_type = #tpu.core_type<tc>, window_params = [{transform_indices = @transform_0, window_bounds = array<i64: 56, 128>}, {pipeline_mode = #tpu.pipeline_mode<synchronous>, transform_indices = @transform_1, window_bounds = array<i64: 128, 128>}, {pipeline_mode = #tpu.pipeline_mode<synchronous>, transform_indices = @transform_2, window_bounds = array<i64: 1, 128>}, {transform_indices = @transform_3, window_bounds = array<i64: 56, 128>}]} {
    %c0 = arith.constant 0 : index
    %c0_0 = arith.constant 0 : index
    %0 = vector.load %arg1[%c0, %c0_0] : memref<56x128xbf16, #tpu.memory_space<vmem>>, vector<56x128xbf16>
    %c0_1 = arith.constant 0 : index
    %c0_2 = arith.constant 0 : index
    %1 = vector.load %arg2[%c0_1, %c0_2] : memref<128x128xbf16, #tpu.memory_space<vmem>>, vector<128x128xbf16>
    %cst = arith.constant dense<0.000000e+00> : vector<56x128xf32>
    %2 = tpu.matmul %0, %1, %cst {dimension_numbers = #tpu.dot_dimension_numbers<[1], [0], [0], [1], [0, 0, 1, 1], [], []>} : vector<56x128xbf16>, vector<128x128xbf16>, vector<56x128xf32> -> vector<56x128xf32>
    %c0_3 = arith.constant 0 : index
    %c0_4 = arith.constant 0 : index
    %3 = vector.load %arg3[%c0_3, %c0_4] : memref<1x128xf32, #tpu.memory_space<vmem>>, vector<1x128xf32>
    %4 = vector.broadcast %3 : vector<1x128xf32> to vector<56x128xf32>
    %5 = arith.addf %2, %4 : vector<56x128xf32>
    %c0_5 = arith.constant 0 : index
    %c0_6 = arith.constant 0 : index
    %6 = vector.load %arg4[%c0_5, %c0_6] : memref<56x128xf32, #tpu.memory_space<vmem>>, vector<56x128xf32>
    tpu.vector_store %arg4[%c0_5, %c0_6], %5 {strides = array<i32>} : memref<56x128xf32, #tpu.memory_space<vmem>>, vector<56x128xf32>,
    return
  }
  func.func @transform_0(%arg0: i32) -> (i32, i32) {
    %c0_i32 = arith.constant 0 : i32
    %c0_i32_0 = arith.constant 0 : i32
    return %arg0, %c0_i32 : i32, i32
  }
  func.func @transform_1(%arg0: i32) -> (i32, i32) {
    %c0_i32 = arith.constant 0 : i32
    %c0_i32_0 = arith.constant 0 : i32
    %c0_i32_1 = arith.constant 0 : i32
    return %c0_i32, %c0_i32_0 : i32, i32
  }
  func.func @transform_2(%arg0: i32) -> (i32, i32) {
    %c0_i32 = arith.constant 0 : i32
    %c0_i32_0 = arith.constant 0 : i32
    %c0_i32_1 = arith.constant 0 : i32
    return %c0_i32, %c0_i32_0 : i32, i32
  }
  func.func @transform_3(%arg0: i32) -> (i32, i32) {
    %c0_i32 = arith.constant 0 : i32
    %c0_i32_0 = arith.constant 0 : i32
    return %arg0, %c0_i32 : i32, i32
  }
}

</mosaic_0001>

<bundles_post_ra>
// kernel: tpu_custom_call.1
= control target key start
LH: loop header
LB: loop body
LE: loop exit
PB: predicated region body
PF: predicated region fallthrough
CT: control target
= control target key end

     0   :  { %8 = vsyncpa [#allocation3], 0  ;;  %s1002_s0 = inlined_call_operand.hbm [shape: bf16[112,128], index: 0, kind: input, shape index: {}]   ;;  %s1003_s1 = inlined_call_operand.hbm [shape: bf16[128,128], index: 1, kind: input, shape index: {}]   ;;  %s1004_s2 = inlined_call_operand.vmem [shape: f32[1,128], index: 2, kind: input, shape index: {}]   ;;  %s1005_s3 = inlined_call_operand.hbm [shape: f32[112,128], index: 3, kind: output, shape index: {}]  }
   0x1   :  { %10 = vsyncpa [#allocation3 + $0x1], 0 }
   0x2   :  { %11 = vsyncpa [#allocation6], 0 }
   0x3   :  { %12 = vsyncpa [#allocation4], 0 }
   0x4   :  { %14 = vsyncpa [#allocation4 + $0x1], 0  ;;  %s785_s12 = smov 0   ;;  %s787_s13 = smov 0  }
   0x5   :  { %s789_s14 = smov 0   ;;  %s791_s15 = smov 0  }
   0x6 LB: > { %s806_s16 = sadd.s32 4294967295, %s756_s15   ;;  %s475_s17 = sadd.s32 4294967294, %s756_s15   ;;  %s756_s15 = sphi %s791_s15, %s1025_s15   ;;  %s752_s14 = sphi %s789_s14, %s1024_s14   ;;  %s748_s13 = sphi %s787_s13, %s1023_s13   ;;  %s744_s12 = sphi %s785_s12, %s1022_s12  }
   0x7   : > { %p40_p0 = scmp.ne.s32.totalorder %s748_s13, %s744_s12  ;;  %p1006_p1 = scmp.eq.s32.totalorder %s806_s16, 0 }
   0x8   : > { %p112_p3 = scmp.eq.s32.totalorder %s475_s17, 1  ;;  %p476_p5 = scmp.ge.s32.totalorder %s756_s15, 1 }
   0x9   : > { %p815_p4 = por %p1006_p1, %p40_p0  ;;  %p119_p7 = scmp.lt.s32.totalorder %s756_s15, 3 }
   0xa   : > { %p820_p6 = por %p112_p3, %p40_p0  ;;  %s758_s21 = smov [#allocation5]  }
   0xb   : > { %s1009_s18 = scalar_select %p815_p4, 1, 0 }
   0xc   : > { %s1010_s19 = scalar_select %p820_p6, 1, 0 }
   0xd   : > { %p825_p8 = pnand %p476_p5, %p119_p7  ;;  %s131_s22 = sshll.u32 %s758_s21, 4  ;;  %s829_s22 = int_to_ptr.vmem [resolvable:$true] %s131_s22 }
   0xe   : > { %s841_s24 = sadd.s32 1, %s756_s15   ;;  %s27_s25 = sadd.s32 1, %s752_s14 }
   0xf   : > { %s1011_s20 = scalar_select %p825_p8, 1, 0 }
  0x10   : > { %p563_p9 = pneg %p825_p8  ;;  %s24_s26 = ssub.s32 %s756_s15, %s841_s24 }
  0x11   : > { %s628_s29 = scalar_lea.hbm %s1003_s1, 1024 }
  0x12   : > { %p836_p11 = pnand %p563_p9, %p1006_p1  ;;  %p629_p12 = scmp.ne.s32.totalorder %s1003_s1, %s628_s29 }
  0x13   : > { %p635_p5 = scmp.lt.u32.totalorder %s628_s29, %s1003_s1 }
  0x14   : > { %p630_p13 = pneg %p836_p11 }
  0x16   : > { %p631_p0 = pnand %p630_p13, %p629_p12 }
  0x18   : > { %p632_p3 = pneg %p631_p0 }
  0x1a   : > { %p637_p7 = pnand %p635_p5, %p632_p3 }
  0x1c   : > { %640 = shalt.err (!%p637_p7)
}
  0x1d   : > { %s641_s7 = scalar_lea.vmem %s829_s22, 1024  ;;  %p649_p2 = scmp.lt.s32.totalorder %s829_s22, %s829_s22 }
  0x1e   : > { %p642_p9 = scmp.ne.s32.totalorder %s829_s22, %s641_s7  ;;  %p650_p6 = scmp.lt.s32.totalorder %s641_s7, %s641_s7 }
  0x20   : > { %p644_p10 = pnand %p642_p9, %p630_p13  ;;  %p651_p4 = por %p650_p6, %p649_p2 }
  0x22   : > { %p645_p1 = pneg %p644_p10 }
  0x24   : > { %p652_p8 = pnand %p651_p4, %p645_p1 }
  0x26   : > { %655 = shalt.err (!%p652_p8)
}
  0x27   : > { %s759_s8 = smov 64   ;;  %s760_s9 = smov 4  }
  0x28   : > { %566 = dma.hbm_to_vmem [thread:$0]  (!%p836_p11), %s1003_s1, 1024, %s829_s22, [#allocation6], %s759_s8, %s759_s8, %s760_s9  }
  0x29   : > { %p25_p1 = scmp.eq.s32.totalorder %s24_s26, 0  ;;  %p34_p2 = scmp.ne.s32.totalorder %s752_s14, %s748_s13 }
  0x2a   : > { %p35_p4 = scmp.eq.s32.totalorder %s756_s15, 0  ;;  %p576_p6 = scmp.lt.s32.totalorder %s756_s15, 2 }
  0x2b   : > { %s875_s17 = scalar_select %p25_p1, %s752_s14, %s27_s25  }
  0x2c   : > { %p36_p8 = por %p35_p4, %p34_p2  ;;  %p1013_p10 = scmp.eq.s32.totalorder %s806_s16, 1 }
  0x2d   : > { %s148_s23 = sand.u32 1, %s752_s14   ;;  %s498_s27 = smul.u32 448, %s756_s15 }
  0x2e   : > { %p879_p12 = por %p1013_p10, %p34_p2  ;;  %s552_s28 = smul.u32 28, %s148_s23 }
  0x2f   : > { %p885_p13 = pnand %p576_p6, %p36_p8  ;;  %s892_s25 = scalar_lea.hbm %s1002_s0, %s498_s27 }
  0x30   : > { %s152_s30 = scalar_lea.vmem [#allocation2], %s552_s28  ;;  %s896_s5 = scalar_lea.sflag [#allocation3], %s148_s23 }
  0x31   : > { %s159_s4 = sshll.u32 %s152_s30, 4  ;;  %s656_s6 = scalar_lea.hbm %s892_s25, 448  ;;  %s894_s4 = int_to_ptr.vmem [resolvable:$true] %s159_s4 }
  0x32   : > { %p657_p11 = scmp.ne.s32.totalorder %s892_s25, %s656_s6  ;;  %p658_p0 = pneg %p885_p13 }
  0x33   : > { %s661_s11 = scalar_lea.hbm %s1002_s0, 896  ;;  %p662_p7 = scmp.lt.u32.totalorder %s892_s25, %s1002_s0 }
  0x34   : > { %p659_p3 = pnand %p658_p0, %p657_p11  ;;  %p663_p9 = scmp.lt.u32.totalorder %s661_s11, %s656_s6 }
  0x35   : > { %p665_p2 = scmp.lt.u32.totalorder %s656_s6, %s892_s25 }
  0x36   : > { %p660_p5 = pneg %p659_p3  ;;  %p664_p1 = por %p663_p9, %p662_p7 }
  0x38   : > { %p666_p4 = por %p665_p2, %p664_p1 }
  0x3a   : > { %p667_p6 = pnand %p666_p4, %p660_p5 }
  0x3c   : > { %670 = shalt.err (!%p667_p6)
}
  0x3d   : > { %s671_s23 = scalar_lea.vmem %s894_s4, 448  ;;  %s761_s28 = smov [#allocation2]  }
  0x3e   : > { %p672_p8 = scmp.ne.s32.totalorder %s894_s4, %s671_s23  ;;  %s676_s26 = sshll.u32 %s761_s28, 4  ;;  %s677_s26 = int_to_ptr.vmem [resolvable:$false] %s676_s26 }
  0x3f   : > { %s678_s30 = scalar_lea.vmem %s677_s26, 896  ;;  %p679_p3 = scmp.lt.s32.totalorder %s894_s4, %s677_s26 }
  0x40   : > { %p674_p10 = pnand %p672_p8, %p658_p0  ;;  %p680_p7 = scmp.lt.s32.totalorder %s678_s30, %s671_s23 }
  0x42   : > { %p675_p11 = pneg %p674_p10  ;;  %p681_p9 = por %p680_p7, %p679_p3 }
  0x44   : > { %p682_p1 = pnand %p681_p9, %p675_p11 }
  0x46   : > { %685 = shalt.err (!%p682_p1)
}
  0x47   : > { %570 = dma.hbm_to_vmem [thread:$0]  (!%p885_p13), %s892_s25, 448, %s894_s4, %s896_s5, %s759_s8, %s759_s8, %s760_s9  }
  0x48   : > { %p1016_p0 = scmp.ne.s32.totalorder %s1011_s20, 0 }
  0x49   : > { %s930_s6 = sand.u32 (!%p1016_p0), 1, %s748_s13   ;;  %p1017_p5 = scmp.ne.s32.totalorder (!%p1016_p0), %s1009_s18, 0 }
  0x4a   : > { %171 = sbr.rel (%p1016_p0) target bundleno = 350 (0x15e), region = 32  ;;  %s174_s10 = scalar_lea.sflag (!%p1016_p0), [#allocation3], %s930_s6 }
  0x4b   : > { %s553_s7 = smul.u32 (!%p1016_p0), 28, %s930_s6 }
  0x4d   : > { %s934_s11 = scalar_lea.vmem (!%p1016_p0), [#allocation2], %s553_s7 }
  0x51   : > { %731 = dma.done.wait (%p1017_p5), %s174_s10, 448  }
  0x52   : > { %733 = vsyncadd (%p1017_p5), %s174_s10, 4294966848  ;;  %p1018_p13 = scmp.eq.s32.totalorder %s806_s16, 0 }
  0x54   : > { %735 = dma.done.wait (%p1018_p13), [#allocation6], 1024   ;;  %p1019_p2 = pmov %p1018_p13 }
  0x55   : > { %v616_v0 = vld [vmem:[#allocation5] sm:$0xff]   ;;  %v617_v1 = vld [vmem:[#allocation5 + $0x8] sm:$0xff]   ;;  %v618_v2 = vld [vmem:[#allocation5 + $0x10] sm:$0xff]   ;;  %s554_s18 = smul.u32 56, %s930_s6  ;;  %s379_s27 = scalar_lea.sflag [#allocation4], %s930_s6 }
  0x56   : > { %737 = vsyncadd (%p1019_p2), [#allocation6], 4294966272  ;;  %512 = vmatprep.subr.bf16.mxu0 %v616_v0  ;;  %536 = vmatprep.subr.bf16.mxu1 %v616_v0  ;;  %v619_v3 = vld [vmem:[#allocation5 + $0x18] sm:$0xff]   ;;  %v624_v4 = vld [vmem:[%s934_s11] sm:$0xff]   ;;  %s499_s25 = smul.u32 896, %s806_s16  ;;  %s762_s23 = smov [#allocation7]  }
  0x57   : > { %513 = vmatpush3.bf16.msra.mxu0 %v616_v0  ;;  %544 = vmatpush3.bf16.msra.mxu1 %v616_v0  ;;  %v625_v5 = vld [vmem:[%s934_s11 + $0x10] sm:$0xff]   ;;  %v620_v6 = vld [vmem:[#allocation5 + $0x20] sm:$0xff]   ;;  %v621_v7 = vld [vmem:[#allocation5 + $0x28] sm:$0xff]   ;;  %s203_s9 = scalar_lea.vmem [#allocation7], %s554_s18  ;;  %s690_s28 = sshll.u32 %s762_s23, 4  ;;  %s691_s28 = int_to_ptr.vmem [resolvable:$false] %s690_s28 }
  0x58   : > { %514 = vmatprep.subr.bf16.mxu0 %v617_v1  ;;  %537 = vmatprep.subr.bf16.mxu1 %v617_v1  ;;  %v622_v8 = vld [vmem:[#allocation5 + $0x30] sm:$0xff]   ;;  %v623_v9 = vld [vmem:[#allocation5 + $0x38] sm:$0xff]   ;;  %v482_v12 = vld [vmem:[%s1004_s2] ss:$0 sm:$0xff]  ;;  %s392_s29 = sshll.u32 %s203_s9, 4  ;;  %s958_s5 = scalar_lea.hbm %s1005_s3, %s499_s25  ;;  %s953_s29 = int_to_ptr.vmem [resolvable:$true] %s392_s29 }
  0x59   : > { %528 = vmatprep.mubr.bf16.mxu0 %v624_v4  ;;  %532 = vmatprep.mubr.bf16.mxu1 %v625_v5  ;;  %v626_v10 = vld [vmem:[%s934_s11 + $0x8] sm:$0xff]   ;;  %v627_v11 = vld [vmem:[%s934_s11 + $0x18] ss:$0 sps:$4 sm:$0xff]   ;;  %s686_s22 = scalar_lea.vmem %s953_s29, 896  ;;  %s692_s26 = scalar_lea.vmem %s691_s28, 1792 }
  0x5a   : > { %p687_p4 = scmp.ne.s32.totalorder %s953_s29, %s686_s22  ;;  %p693_p10 = scmp.lt.s32.totalorder %s953_s29, %s691_s28 }
  0x5b   : > { %515 = vmatpush3.bf16.msra.mxu0 %v617_v1  ;;  %545 = vmatpush3.bf16.msra.mxu1 %v617_v1  ;;  %p694_p11 = scmp.lt.s32.totalorder %s692_s26, %s686_s22 }
  0x5c   : > { %516 = vmatprep.subr.bf16.mxu0 %v618_v2  ;;  %538 = vmatprep.subr.bf16.mxu1 %v618_v2  ;;  %p688_p6 = pnand %p687_p4, %p879_p12 }
  0x5d   : > { %p695_p3 = por %p694_p11, %p693_p10 }
  0x5e   : > { %p689_p8 = pneg %p688_p6 }
  0x5f   : > { %517 = vmatpush3.bf16.msra.mxu0 %v618_v2  ;;  %546 = vmatpush3.bf16.msra.mxu1 %v618_v2 }
  0x60   : > { %518 = vmatprep.subr.bf16.mxu0 %v619_v3  ;;  %539 = vmatprep.subr.bf16.mxu1 %v619_v3  ;;  %p696_p7 = pnand %p695_p3, %p689_p8 }
  0x63   : > { %519 = vmatpush3.bf16.msra.mxu0 %v619_v3  ;;  %547 = vmatpush3.bf16.msra.mxu1 %v619_v3 }
  0x64   : > { %520 = vmatprep.subr.bf16.mxu0 %v620_v6  ;;  %540 = vmatprep.subr.bf16.mxu1 %v620_v6 }
  0x67   : > { %521 = vmatpush3.bf16.msra.mxu0 %v620_v6  ;;  %548 = vmatpush3.bf16.msra.mxu1 %v620_v6 }
  0x68   : > { %522 = vmatprep.subr.bf16.mxu0 %v621_v7  ;;  %541 = vmatprep.subr.bf16.mxu1 %v621_v7 }
  0x6b   : > { %523 = vmatpush3.bf16.msra.mxu0 %v621_v7  ;;  %549 = vmatpush3.bf16.msra.mxu1 %v621_v7 }
  0x6c   : > { %524 = vmatprep.subr.bf16.mxu0 %v622_v8  ;;  %542 = vmatprep.subr.bf16.mxu1 %v622_v8 }
  0x6f   : > { %525 = vmatpush3.bf16.msra.mxu0 %v622_v8  ;;  %550 = vmatpush3.bf16.msra.mxu1 %v622_v8 }
  0x70   : > { %526 = vmatprep.subr.bf16.mxu0 %v623_v9  ;;  %543 = vmatprep.subr.bf16.mxu1 %v623_v9 }
  0x73   : > { %527 = vmatpush3.bf16.msra.mxu0 %v623_v9  ;;  %551 = vmatpush3.bf16.msra.mxu1 %v623_v9 }
  0x76   : > { %529 = vmatmul.mubr.bf16.vlgmr.msra.gmra.mrb[0].mxu0 %v626_v10  ;;  %533 = vmatmul.mubr.bf16.vlgmr.msra.gmra.mrb[0].mxu1 %v627_v11 }
 0x149   : > { %v530_v13 = vpop.f32.mrb[0].mxu0  ;;  %v534_v14 = vpop.f32.mrb[0].mxu1 }
 0x14a   : > { %v350_v15 = vadd.f32 %v530_v13, %v482_v12  ;;  %v366_v16 = vadd.f32 %v534_v14, %v482_v12  ;;  %v341_v17 = vpop.f32.mrb[1].mxu0  ;;  %v357_v18 = vpop.f32.mrb[1].mxu1 }
 0x14b   : > { %v342_v19 = vadd.f32 %v482_v12, %v341_v17  ;;  %v358_v20 = vadd.f32 %v482_v12, %v357_v18  ;;  %v531_v21 = vpop.f32.mrb[2].mxu0  ;;  %v535_v22 = vpop.f32.mrb[2].mxu1 }
 0x14c   : > { %373 = vst [vmem:[%s203_s9 + $0x10] sm:$0xff] %v350_v15  ;;  %377 = vst [vmem:[%s203_s9 + $0x30] sm:$0xff] %v366_v16  ;;  %v353_v23 = vadd.f32 %v531_v21, %v482_v12  ;;  %v344_v24 = vpop.f32.mrb[3].mxu0  ;;  %v360_v25 = vpop.f32.mrb[3].mxu1 }
 0x14d   : > { %371 = vst [vmem:[%s203_s9] sm:$0xff] %v342_v19  ;;  %375 = vst [vmem:[%s203_s9 + $0x20] sm:$0xff] %v358_v20  ;;  %v345_v26 = vadd.f32 %v482_v12, %v344_v24  ;;  %v361_v27 = vadd.f32 %v482_v12, %v360_v25 }
 0x14e   : > { %374 = vst [vmem:[%s203_s9 + $0x18] sm:$0xff] %v353_v23 }
 0x14f   : > { %372 = vst [vmem:[%s203_s9 + $0x8] sm:$0xff] %v345_v26  ;;  %376 = vst [vmem:[%s203_s9 + $0x28] sm:$0xff] %v361_v27 }
 0x150   : > { %699 = shalt.err (!%p696_p7)
}
 0x151   : > { %s700_s30 = scalar_lea.hbm %s958_s5, 896  ;;  %s704_s11 = scalar_lea.hbm %s1005_s3, 1792 }
 0x152   : > { %p701_p9 = scmp.ne.s32.totalorder %s958_s5, %s700_s30  ;;  %p705_p5 = scmp.lt.u32.totalorder %s958_s5, %s1005_s3 }
 0x153   : > { %p706_p13 = scmp.lt.u32.totalorder %s704_s11, %s700_s30  ;;  %p708_p4 = scmp.lt.u32.totalorder %s700_s30, %s958_s5 }
 0x154   : > { %p702_p1 = pnand %p701_p9, %p879_p12 }
 0x155   : > { %p707_p2 = por %p706_p13, %p705_p5 }
 0x156   : > { %p703_p0 = pneg %p702_p1 }
 0x157   : > { %p709_p6 = por %p708_p4, %p707_p2 }
 0x159   : > { %p710_p8 = pnand %p709_p6, %p703_p0 }
 0x15b   : > { %713 = shalt.err (!%p710_p8)
}
 0x15c   : > { %s763_s8 = smov 128   ;;  %s764_s9 = smov 8  }
 0x15d   : > { %561 = dma.vmem_to_hbm [thread:$0]  (%p879_p12), %s953_s29, 896, %s958_s5, %s379_s27, %s763_s8, %s763_s8, %s764_s9  }
 0x15e PF: > { %s407_s25 = sand.u32 1, %s744_s12   ;;  %p1020_p10 = scmp.ne.s32.totalorder %s1010_s19, 0 }
 0x15f   : > { %p1021_p11 = scmp.ge.s32.totalorder %s756_s15, 2  ;;  %s408_s16 = scalar_lea.sflag [#allocation4], %s407_s25 }
 0x161   : > { %p572_p3 = pnand %p1021_p11, %p1020_p10 }
 0x163   : > { %739 = dma.done.wait (!%p572_p3), %s408_s16, 896  }
 0x164   : > { %741 = vsyncadd (!%p572_p3), %s408_s16, 4294966400  ;;  %p17_p7 = scmp.ge.s32.totalorder %s841_s24, 4   ;;  %s1022_s12 = smov %s748_s13 }
 0x165   : > { %s1023_s13 = smov %s752_s14  ;;  %s1024_s14 = smov %s875_s17 }
 0x166   : > { %s1025_s15 = smov %s841_s24  ;;  %19 = sbr.rel (!%p17_p7) target bundleno = 6 (0x6), region = 81 }
 0x16d   :  { %413 = vsyncpa [#allocation3], 1 }
 0x16e   :  { %415 = vsyncpa [#allocation3 + $0x1], 1 }
 0x16f   :  { %416 = vsyncpa [#allocation6], 1 }
 0x170   :  { %417 = vsyncpa [#allocation4], 1 }
 0x171   :  { %419 = vsyncpa [#allocation4 + $0x1], 1 }

</bundles_post_ra>
